<compile_context>
chip_gen: v6e
topology: v6e:2x2x1
jax: 0.10.0
libtpu: 0.0.40
codegen_flags: <defaults>
</compile_context>

<pallas_src>
import numpy as np
import jax
import jax.numpy as jnp
from jax.experimental import pallas as pl
from jax.experimental.pallas import tpu as pltpu


# --------------------------------------------------------------------------
# Pallas kernel: one block of B planes per grid step.
#   col pass:  (B*H, W) @ (W, Wo)              -> (B*H, Wo)   [one big matmul]
#   row pass:  batched (B, Ho, H) @ (B, H, Wo) -> (B, Ho, Wo)
# --------------------------------------------------------------------------
def _blurpool_kernel(t_ref, s_ref, x_ref, o_ref):
    Bp, H, W = x_ref.shape
    Ho = t_ref.shape[0]
    Wo = s_ref.shape[1]

    x = x_ref[...]                                            # (B, H, W)

    # Column (width) pass as a single 2-D matmul, M = B*H (leading-dim merge
    # only, no lane relayout), f32 accumulation on the MXU.
    tmp = jax.lax.dot_general(
        x.reshape(Bp * H, W), s_ref[...],
        dimension_numbers=(((1,), (0,)), ((), ())),
        preferred_element_type=jnp.float32)                   # (B*H, Wo) f32
    tmp = tmp.reshape(Bp, H, Wo).astype(t_ref.dtype)          # back to MXU dtype

    # Row (height) pass: batched matmul, T broadcast over the plane batch.
    t_b = jnp.broadcast_to(t_ref[...][None], (Bp, Ho, H))     # (B, Ho, H)
    out = jax.lax.dot_general(
        t_b, tmp,
        dimension_numbers=(((2,), (1,)), ((0,), (0,))),
        preferred_element_type=jnp.float32)                   # (B, Ho, Wo) f32

    o_ref[...] = out.astype(o_ref.dtype)


# --------------------------------------------------------------------------
# Host-side construction of the (pad-folded) separable matrices.
# --------------------------------------------------------------------------
def _binomial_row(filt_size: int) -> np.ndarray:
    table = {
        1: [1.0],
        2: [1.0, 1.0],
        3: [1.0, 2.0, 1.0],
        4: [1.0, 3.0, 3.0, 1.0],
        5: [1.0, 4.0, 6.0, 4.0, 1.0],
        6: [1.0, 5.0, 10.0, 10.0, 5.0, 1.0],
        7: [1.0, 6.0, 15.0, 20.0, 15.0, 6.0, 1.0],
    }
    return np.asarray(table[filt_size], dtype=np.float64)


def _pad_matrix(n: int, pad_l: int, pad_r: int, pad_type: str) -> np.ndarray:
    """Linear map P with P @ v == pad(v) along one axis (shape (n+pl+pr, n))."""
    n_p = n + pad_l + pad_r
    P = np.zeros((n_p, n), dtype=np.float64)
    for p in range(n_p):
        s = p - pad_l
        if 0 <= s < n:
            P[p, s] = 1.0
        elif pad_type == "zero":
            continue
        elif pad_type in ("refl", "reflect"):
            if s < 0:
                s = -s
            if s >= n:
                s = 2 * (n - 1) - s
            P[p, s] = 1.0
        elif pad_type in ("repl", "replicate"):
            P[p, min(max(s, 0), n - 1)] = 1.0
        else:
            raise ValueError(f"Pad type [{pad_type}] not recognized")
    return P


def _build_ts(H, W, filt_size, stride, pad_type, pad_off):
    a = _binomial_row(filt_size)
    a_norm = a / a.sum()                       # filt = outer(a,a)/(sum a)^2

    pad_l = int(1.0 * (filt_size - 1) / 2) + pad_off
    pad_r = int(np.ceil(1.0 * (filt_size - 1) / 2)) + pad_off
    Hp, Wp = H + pad_l + pad_r, W + pad_l + pad_r
    Ho = (Hp - filt_size) // stride + 1
    Wo = (Wp - filt_size) // stride + 1

    T_raw = np.zeros((Ho, Hp), dtype=np.float64)
    for i in range(Ho):
        T_raw[i, i * stride:i * stride + filt_size] = a_norm
    S_raw = np.zeros((Wp, Wo), dtype=np.float64)
    for j in range(Wo):
        S_raw[j * stride:j * stride + filt_size, j] = a_norm

    # Fold the padding into the selection matrices (no jnp.pad HBM pass):
    #   T_raw @ (P_h @ x) @ S_raw == (T_raw @ P_h) @ x @ (P_w.T @ S_raw)
    P_h = _pad_matrix(H, pad_l, pad_r, pad_type)
    P_w = _pad_matrix(W, pad_l, pad_r, pad_type)
    T_eff = (T_raw @ P_h).astype(np.float32)   # (Ho, H)
    S_eff = (P_w.T @ S_raw).astype(np.float32)  # (W, Wo)
    return T_eff, S_eff, Ho, Wo


# --------------------------------------------------------------------------
# Public wrapper (matches BloorPool.forward for NCHW input).
# --------------------------------------------------------------------------
def blur_pool(x, *, filt_size=3, stride=2, pad_type="zero", pad_off=0,
              compute_dtype=None, block_planes=None):
    N, C, H, W = x.shape
    out_dtype = x.dtype if jnp.issubdtype(x.dtype, jnp.floating) else jnp.float32

    cdt = jnp.dtype(compute_dtype) if compute_dtype is not None else jnp.dtype(jnp.float32)

    T_eff, S_eff, Ho, Wo = _build_ts(H, W, filt_size, stride, pad_type, pad_off)
    T_dev = jnp.asarray(T_eff, dtype=cdt)
    S_dev = jnp.asarray(S_eff, dtype=cdt)

    NC = N * C
    x_flat = x.astype(cdt).reshape(NC, H, W)   # free reshape (row-major)

    in_b = cdt.itemsize
    out_b = jnp.dtype(out_dtype).itemsize

    # Plane-batch size: amortize per-step overhead, stay well under the
    # scoped VMEM limit (conservative for v7x's 64 MiB / 32 MiB-scoped VMEM).
    if block_planes is None:
        per_plane = (2 * H * W * in_b           # double-buffered input block
                     + 2 * Ho * Wo * out_b      # double-buffered output block
                     + H * Wo * 4               # f32 intermediate
                     + Ho * H * in_b)           # broadcast T per plane
        budget = 20 * 1024 * 1024
        B = max(1, min(32, budget // max(per_plane, 1), NC))
    else:
        B = max(1, min(block_planes, NC))
    if NC >= 2:                                  # keep >= 2 grid steps (v7x: 2 TCs)
        B = max(1, min(B, pl.cdiv(NC, 2)))
    num_groups = pl.cdiv(NC, B)

    flops = 2 * NC * (H * W * Wo + Ho * H * Wo)
    bytes_accessed = (NC * H * W * in_b + NC * Ho * Wo * out_b
                      + (Ho * H + W * Wo) * in_b)

    out = pl.pallas_call(
        _blurpool_kernel,
        out_shape=jax.ShapeDtypeStruct((NC, Ho, Wo), out_dtype),
        grid=(num_groups,),
        in_specs=[
            pl.BlockSpec((Ho, H), lambda i: (0, 0)),        # T (shared)
            pl.BlockSpec((W, Wo), lambda i: (0, 0)),        # S (shared)
            pl.BlockSpec((B, H, W), lambda i: (i, 0, 0)),   # B planes / step
        ],
        out_specs=pl.BlockSpec((B, Ho, Wo), lambda i: (i, 0, 0)),
        compiler_params=pltpu.CompilerParams(
            dimension_semantics=("parallel",),
            vmem_limit_bytes=32 * 1024 * 1024),
        cost_estimate=pl.CostEstimate(flops=flops, transcendentals=0,
                                      bytes_accessed=bytes_accessed),
    )(T_dev, S_dev, x_flat)

    return out.reshape(N, C, Ho, Wo)


# --------------------------------------------------------------------------
# Pure-JAX reference: pad + depthwise conv2d (mirrors the PyTorch forward).
# --------------------------------------------------------------------------
def _reference(x, *, filt_size=3, stride=2, pad_type="zero", pad_off=0):
    N, C, H, W = x.shape
    a = _binomial_row(filt_size)
    filt2d = np.outer(a, a)
    filt2d = (filt2d / filt2d.sum()).astype(np.float32)
    w = jnp.tile(jnp.asarray(filt2d)[None, None], (C, 1, 1, 1))  # (C,1,k,k)
    pad_l = int(1.0 * (filt_size - 1) / 2) + pad_off
    pad_r = int(np.ceil(1.0 * (filt_size - 1) / 2)) + pad_off
    mode = {"zero": "constant", "refl": "reflect", "reflect": "reflect",
            "repl": "edge", "replicate": "edge"}[pad_type]
    xp = jnp.pad(x.astype(jnp.float32),
                 ((0, 0), (0, 0), (pad_l, pad_r), (pad_l, pad_r)), mode=mode)
    return jax.lax.conv_general_dilated(
        xp, w, window_strides=(stride, stride), padding="VALID",
        dimension_numbers=("NCHW", "OIHW", "NCHW"), feature_group_count=C)


if __name__ == "__main__":
    key = jax.random.PRNGKey(0)
    N, C, H, W = 2, 4, 16, 16
    x = jax.random.normal(key, (N, C, H, W), dtype=jnp.float32)

    # Default BloorPool: pad_type='zero', filt_size=3, stride=2 (f32 compute).
    out = jax.block_until_ready(blur_pool(x, filt_size=3, stride=2))
    ref = jax.block_until_ready(_reference(x, filt_size=3, stride=2))
    assert out.shape == (N, C, 8, 8), out.shape
    np.testing.assert_allclose(np.asarray(out), np.asarray(ref),
                               rtol=1e-5, atol=1e-5)

    # Reflect padding (folded into T/S) vs. jnp.pad reference.
    out_r = jax.block_until_ready(blur_pool(x, pad_type="reflect"))
    ref_r = jax.block_until_ready(_reference(x, pad_type="reflect"))
    np.testing.assert_allclose(np.asarray(out_r), np.asarray(ref_r),
                               rtol=1e-5, atol=1e-5)

    # bf16 MXU-input path (v6e/v7x bandwidth option), f32 accumulation.
    out_bf = jax.block_until_ready(blur_pool(x, compute_dtype=jnp.bfloat16))
    np.testing.assert_allclose(np.asarray(out_bf), np.asarray(ref),
                               rtol=5e-2, atol=5e-2)

    print("KERNEL_OK")
</pallas_src>

<mosaic_0001>
module attributes {stable_mosaic.version = 11 : i64} {
  func.func @_blurpool_kernel(%arg0: i32, %arg1: memref<8x16xf32, #tpu.memory_space<vmem>>, %arg2: memref<16x8xf32, #tpu.memory_space<vmem>>, %arg3: memref<4x16x16xf32, #tpu.memory_space<vmem>>, %arg4: memref<4x8x8xf32, #tpu.memory_space<vmem>>) attributes {dimension_semantics = [#tpu.dimension_semantics<parallel>], iteration_bounds = array<i64: 2>, scalar_prefetch = 0 : i64, scratch_operands = 0 : i64, tpu.core_type = #tpu.core_type<tc>, window_params = [{pipeline_mode = #tpu.pipeline_mode<synchronous>, transform_indices = @transform_0, window_bounds = array<i64: 8, 16>}, {pipeline_mode = #tpu.pipeline_mode<synchronous>, transform_indices = @transform_1, window_bounds = array<i64: 16, 8>}, {transform_indices = @transform_2, window_bounds = array<i64: 4, 16, 16>}, {transform_indices = @transform_3, window_bounds = array<i64: 4, 8, 8>}]} {
    %c0 = arith.constant 0 : index
    %c0_0 = arith.constant 0 : index
    %c0_1 = arith.constant 0 : index
    %0 = vector.load %arg3[%c0, %c0_0, %c0_1] : memref<4x16x16xf32, #tpu.memory_space<vmem>>, vector<4x16x16xf32>
    %1 = vector.shape_cast %0 : vector<4x16x16xf32> to vector<64x16xf32>
    %c0_2 = arith.constant 0 : index
    %c0_3 = arith.constant 0 : index
    %2 = vector.load %arg2[%c0_2, %c0_3] : memref<16x8xf32, #tpu.memory_space<vmem>>, vector<16x8xf32>
    %cst = arith.constant dense<0.000000e+00> : vector<64x8xf32>
    %3 = tpu.matmul %1, %2, %cst {dimension_numbers = #tpu.dot_dimension_numbers<[1], [0], [0], [1], [0, 0, 1, 1], [], []>} : vector<64x16xf32>, vector<16x8xf32>, vector<64x8xf32> -> vector<64x8xf32>
    %4 = vector.shape_cast %3 : vector<64x8xf32> to vector<4x16x8xf32>
    %c0_4 = arith.constant 0 : index
    %c0_5 = arith.constant 0 : index
    %5 = vector.load %arg1[%c0_4, %c0_5] : memref<8x16xf32, #tpu.memory_space<vmem>>, vector<8x16xf32>
    %6 = vector.shape_cast %5 : vector<8x16xf32> to vector<1x8x16xf32>
    %7 = vector.shape_cast %6 : vector<1x8x16xf32> to vector<1x8x16xf32>
    %8 = vector.broadcast %7 : vector<1x8x16xf32> to vector<4x8x16xf32>
    %cst_6 = arith.constant dense<0.000000e+00> : vector<4x8x8xf32>
    %9 = tpu.matmul %8, %4, %cst_6 {dimension_numbers = #tpu.dot_dimension_numbers<[2], [1], [1], [2], [0, 0, 0, 1, 1, 2], [0], [0]>} : vector<4x8x16xf32>, vector<4x16x8xf32>, vector<4x8x8xf32> -> vector<4x8x8xf32>
    %c0_7 = arith.constant 0 : index
    %c0_8 = arith.constant 0 : index
    %c0_9 = arith.constant 0 : index
    %10 = vector.load %arg4[%c0_7, %c0_8, %c0_9] : memref<4x8x8xf32, #tpu.memory_space<vmem>>, vector<4x8x8xf32>
    tpu.vector_store %arg4[%c0_7, %c0_8, %c0_9], %9 {strides = array<i32>} : memref<4x8x8xf32, #tpu.memory_space<vmem>>, vector<4x8x8xf32>,
    return
  }
  func.func @transform_0(%arg0: i32) -> (i32, i32) {
    %c0_i32 = arith.constant 0 : i32
    %c0_i32_0 = arith.constant 0 : i32
    %c0_i32_1 = arith.constant 0 : i32
    return %c0_i32, %c0_i32_0 : i32, i32
  }
  func.func @transform_1(%arg0: i32) -> (i32, i32) {
    %c0_i32 = arith.constant 0 : i32
    %c0_i32_0 = arith.constant 0 : i32
    %c0_i32_1 = arith.constant 0 : i32
    return %c0_i32, %c0_i32_0 : i32, i32
  }
  func.func @transform_2(%arg0: i32) -> (i32, i32, i32) {
    %c0_i32 = arith.constant 0 : i32
    %c0_i32_0 = arith.constant 0 : i32
    %c0_i32_1 = arith.constant 0 : i32
    return %arg0, %c0_i32, %c0_i32_0 : i32, i32, i32
  }
  func.func @transform_3(%arg0: i32) -> (i32, i32, i32) {
    %c0_i32 = arith.constant 0 : i32
    %c0_i32_0 = arith.constant 0 : i32
    %c0_i32_1 = arith.constant 0 : i32
    return %arg0, %c0_i32, %c0_i32_0 : i32, i32, i32
  }
}

</mosaic_0001>

<bundles_post_ra>
// kernel: tpu_custom_call.1
= control target key start
LH: loop header
LB: loop body
LE: loop exit
PB: predicated region body
PF: predicated region fallthrough
CT: control target
= control target key end

     0   :  { %8 = vsyncpa [#allocation3], 0  ;;  %s1162_s0 = inlined_call_operand.vmem [shape: f32[8,16], index: 0, kind: input, shape index: {}]   ;;  %s1163_s1 = inlined_call_operand.vmem [shape: f32[16,8], index: 1, kind: input, shape index: {}]   ;;  %s1164_s2 = inlined_call_operand.hbm [shape: f32[8,16,16], index: 2, kind: input, shape index: {}]   ;;  %s1165_s3 = inlined_call_operand.hbm [shape: f32[8,8,8], index: 3, kind: output, shape index: {}]  }
   0x1   :  { %10 = vsyncpa [#allocation3 + $0x1], 0 }
   0x2   :  { %11 = vsyncpa [#allocation4], 0 }
   0x3   :  { %13 = vsyncpa [#allocation4 + $0x1], 0  ;;  %s978_s12 = smov 0   ;;  %s980_s13 = smov 0  }
   0x4   :  { %s982_s14 = smov 0   ;;  %s984_s15 = smov 0  }
   0x5 LB: > { %s999_s16 = sadd.s32 4294967295, %s948_s15   ;;  %s708_s17 = sadd.s32 4294967294, %s948_s15   ;;  %s948_s15 = sphi %s984_s15, %s1180_s15   ;;  %s944_s14 = sphi %s982_s14, %s1179_s14   ;;  %s940_s13 = sphi %s980_s13, %s1178_s13   ;;  %s936_s12 = sphi %s978_s12, %s1177_s12  }
   0x6   : > { %s1003_s18 = sadd.s32 1, %s948_s15   ;;  %s68_s19 = sadd.s32 1, %s944_s14 }
   0x7   : > { %s65_s20 = ssub.s32 %s948_s15, %s1003_s18  ;;  %p75_p0 = scmp.ne.s32.totalorder %s944_s14, %s940_s13 }
   0x8   : > { %p66_p1 = scmp.eq.s32.totalorder %s65_s20, 0  ;;  %p76_p2 = scmp.eq.s32.totalorder %s948_s15, 0 }
   0x9   : > { %p81_p3 = scmp.ne.s32.totalorder %s940_s13, %s936_s12  ;;  %p82_p4 = scmp.eq.s32.totalorder %s999_s16, 0 }
   0xa   : > { %s1015_s21 = scalar_select %p66_p1, %s944_s14, %s68_s19  }
   0xb   : > { %p1017_p5 = por %p76_p2, %p75_p0  ;;  %p1021_p6 = por %p82_p4, %p81_p3 }
   0xc   : > { %p105_p7 = scmp.eq.s32.totalorder %s999_s16, 1  ;;  %p111_p8 = scmp.eq.s32.totalorder %s708_s17, 1 }
   0xd   : > { %s1169_s23 = scalar_select %p1021_p6, 1, 0 }
   0xe   : > { %p816_p10 = scmp.lt.s32.totalorder %s948_s15, 2  ;;  %p1028_p11 = por %p105_p7, %p75_p0 }
   0xf   : > { %p1032_p12 = por %p111_p8, %p81_p3  ;;  %s137_s26 = sand.u32 1, %s944_s14  }
  0x10   : > { %s1170_s24 = scalar_select %p1028_p11, 1, 0 }
  0x11   : > { %s1171_s25 = scalar_select %p1032_p12, 1, 0 }
  0x12   : > { %s736_s27 = sshll.u32 %s948_s15, 10  ;;  %s711_s28 = sshll.u32 %s137_s26, 6 }
  0x13   : > { %s1041_s4 = scalar_lea.hbm %s1164_s2, %s736_s27  ;;  %s141_s5 = scalar_lea.vmem [#allocation2], %s711_s28 }
  0x14   : > { %s149_s6 = sshll.u32 %s141_s5, 4  ;;  %p1045_p13 = pnand %p816_p10, %p1017_p5  ;;  %s1049_s6 = int_to_ptr.vmem [resolvable:$true] %s149_s6 }
  0x15   : > { %s1051_s8 = scalar_lea.sflag [#allocation3], %s137_s26  ;;  %s856_s9 = scalar_lea.hbm %s1041_s4, 1024 }
  0x16   : > { %p857_p0 = scmp.ne.s32.totalorder %s1041_s4, %s856_s9  ;;  %p858_p1 = pneg %p1045_p13 }
  0x17   : > { %s861_s17 = scalar_lea.hbm %s1164_s2, 2048  ;;  %p862_p4 = scmp.lt.s32.totalorder %s1041_s4, %s1164_s2 }
  0x18   : > { %p859_p2 = pnand %p858_p1, %p857_p0  ;;  %p863_p5 = scmp.lt.s32.totalorder %s861_s17, %s856_s9 }
  0x1a   : > { %p860_p3 = pneg %p859_p2  ;;  %p864_p7 = por %p863_p5, %p862_p4 }
  0x1c   : > { %p865_p8 = pnand %p864_p7, %p860_p3 }
  0x1e   : > { %868 = shalt.err (!%p865_p8)
}
  0x1f   : > { %s869_s22 = scalar_lea.vmem %s1049_s6, 1024  ;;  %s950_s26 = smov [#allocation2]  }
  0x20   : > { %p870_p10 = scmp.ne.s32.totalorder %s1049_s6, %s869_s22  ;;  %s874_s27 = sshll.u32 %s950_s26, 4  ;;  %s875_s27 = int_to_ptr.vmem [resolvable:$false] %s874_s27 }
  0x21   : > { %s876_s28 = scalar_lea.vmem %s875_s27, 2048  ;;  %p877_p2 = scmp.lt.s32.totalorder %s1049_s6, %s875_s27 }
  0x22   : > { %p872_p9 = pnand %p870_p10, %p858_p1  ;;  %p878_p12 = scmp.lt.s32.totalorder %s876_s28, %s869_s22 }
  0x24   : > { %p873_p0 = pneg %p872_p9  ;;  %p879_p11 = por %p878_p12, %p877_p2 }
  0x26   : > { %p880_p6 = pnand %p879_p11, %p873_p0 }
  0x28   : > { %883 = shalt.err (!%p880_p6)
}
  0x29   : > { %s951_s29 = smov 128   ;;  %s952_s30 = smov 8  }
  0x2a   : > { %811 = dma.hbm_to_vmem [thread:$0]  (!%p1045_p13), %s1041_s4, 1024, %s1049_s6, %s1051_s8, %s951_s29, %s951_s29, %s952_s30  }
  0x2b   : > { %p715_p9 = scmp.ge.s32.totalorder %s948_s15, 1  ;;  %p157_p1 = scmp.lt.s32.totalorder %s948_s15, 3 }
  0x2d   : > { %p158_p3 = pnand %p715_p9, %p157_p1 }
  0x2e   : > { %s1075_s5 = sand.u32 (!%p158_p3), 1, %s940_s13   ;;  %p1173_p6 = scmp.ne.s32.totalorder (!%p158_p3), %s1169_s23, 0 }
  0x2f   : > { %161 = sbr.rel (%p158_p3) target bundleno = 474 (0x1da), region = 32  ;;  %s716_s9 = sshll.u32 (!%p158_p3), %s1075_s5, 6 }
  0x30   : > { %s164_s10 = scalar_lea.sflag (!%p158_p3), [#allocation3], %s1075_s5  ;;  %s167_s11 = scalar_lea.vmem (!%p158_p3), [#allocation2], %s716_s9 }
  0x34   : > { %927 = dma.done.wait (%p1173_p6), %s164_s10, 1024  }
  0x35   : > { %929 = vsyncadd (%p1173_p6), %s164_s10, 4294966272  ;;  %vm202_vm0 = vcmask 130048   ;;  %v201_v0 = vld [vmem:[%s1163_s1 + $0x8] sm:$0xff]  ;;  %v200_v1 = vld [vmem:[%s1163_s1] sm:$0xff]  ;;  %v953_v10 = vmov 0.0   ;;  %vm954_vm1 = vmmov 0  }
  0x36   : > { %v192_v2 = vld [vmem:[%s167_s11] sm:$0xff]  ;;  %760 = vmatprep.subr.mxu0 %v201_v0  ;;  %v193_v3 = vld [vmem:[%s167_s11 + $0x8] sm:$0xff]  ;;  %v194_v4 = vld [vmem:[%s167_s11 + $0x10] sm:$0xff]  ;;  %776 = vmatprep.subr.mxu1 %v953_v10  ;;  %s717_s19 = sshll.u32 %s1075_s5, 5  ;;  %vm616_vm2 = vcmask 64512   ;;  %s737_s26 = sshll.u32 %s999_s16, 9 }
  0x37   : > { %764 = vmatprep.mubr.msk.f32.mxu0 %vm202_vm0, %v192_v2  ;;  %761 = vmatpush3.msra.mxu0 %v201_v0  ;;  %v195_v5 = vld [vmem:[%s167_s11 + $0x18] sm:$0xff]  ;;  %v196_v6 = vld [vmem:[%s167_s11 + $0x20] sm:$0xff]  ;;  %v197_v7 = vld [vmem:[%s167_s11 + $0x28] sm:$0xff]  ;;  %s189_s20 = scalar_lea.vmem [#allocation5], %s717_s19  ;;  %s1118_s29 = scalar_lea.hbm %s1165_s3, %s737_s26 }
  0x38   : > { %762 = vmatprep.subr.mxu0 %v200_v1  ;;  %v198_v8 = vld [vmem:[%s167_s11 + $0x30] sm:$0xff]  ;;  %v199_v9 = vld [vmem:[%s167_s11 + $0x38] sm:$0xff]  ;;  %780 = vmatprep.mubr.msk.f32.mxu1 %vm954_vm1, %v953_v10  ;;  %v332_v12 = vld [vmem:[%s1162_s0] sm:$0xff]  ;;  %s635_s22 = sshll.u32 %s189_s20, 4  ;;  %s622_s30 = scalar_lea.sflag [#allocation4], %s1075_s5  ;;  %s1112_s22 = int_to_ptr.vmem [resolvable:$true] %s635_s22 }
  0x39   : > { %763 = vmatpush3.msra.mxu0 %v200_v1  ;;  %s884_s16 = scalar_lea.vmem %s1112_s22, 512  ;;  %p1174_p12 = scmp.ne.s32.totalorder %s1170_s24, 0 }
  0x3a   : > { %765 = vmatmul.mubr.msk.f32.vlgmr.msra.gmra.mxu0 %vm202_vm0, %v193_v3  ;;  %p885_p11 = scmp.ne.s32.totalorder %s1112_s22, %s884_s16  ;;  %s955_s9 = smov [#allocation5]  }
  0x3b   : > { %767 = vmatprep.mubr.msk.f32.mxu0 %vm202_vm0, %v194_v4  ;;  %s888_s10 = sshll.u32 %s955_s9, 4  ;;  %s889_s10 = int_to_ptr.vmem [resolvable:$false] %s888_s10 }
  0x3c   : > { %p886_p13 = pnand %p885_p11, %p1174_p12  ;;  %s890_s11 = scalar_lea.vmem %s889_s10, 1024 }
  0x3d   : > { %p891_p5 = scmp.lt.s32.totalorder %s1112_s22, %s889_s10  ;;  %p892_p7 = scmp.lt.s32.totalorder %s890_s11, %s884_s16 }
  0x3e   : > { %768 = vmatmul.mubr.msk.f32.gmra.mxu0 %vm202_vm0, %v195_v5  ;;  %p887_p4 = pneg %p886_p13 }
  0x3f   : > { %770 = vmatprep.mubr.msk.f32.mxu0 %vm202_vm0, %v196_v6  ;;  %p893_p8 = por %p892_p7, %p891_p5 }
  0x41   : > { %p894_p10 = pnand %p893_p8, %p887_p4 }
  0x42   : > { %771 = vmatmul.mubr.msk.f32.gmra.mxu0 %vm202_vm0, %v197_v7 }
  0x43   : > { %773 = vmatprep.mubr.msk.f32.mxu0 %vm202_vm0, %v198_v8 }
  0x46   : > { %774 = vmatmul.mubr.msk.f32.gmra.mxu0 %vm202_vm0, %v199_v9 }
  0xfa   : > { %v766_v11 = vpop.f32.mrf.mxu0 }
  0xfb   : > { %777 = vmatpush3.msra.mxu1 %v766_v11 }
  0xfc   : > { %v293_v13 = vpop.f32.mrf.mxu0  ;;  %778 = vmatprep.subr.mxu1 %v953_v10 }
  0xfd   : > { %779 = vmatpush3.msra.mxu1 %v293_v13 }
  0xfe   : > { %v769_v14 = vpop.f32.mrf.mxu0  ;;  %781 = vmatmul.mubr.msk.f32.vlgmr.msra.gmra.mxu1 %vm202_vm0, %v332_v12  ;;  %783 = vmatprep.subr.mxu1 %v953_v10 }
  0xff   : > { %784 = vmatpush3.msra.mxu1 %v769_v14  ;;  %787 = vmatprep.mubr.msk.f32.mxu1 %vm954_vm1, %v953_v10 }
 0x100   : > { %v303_v15 = vpop.f32.mrf.mxu0  ;;  %785 = vmatprep.subr.mxu1 %v953_v10 }
 0x101   : > { %786 = vmatpush3.msra.mxu1 %v303_v15 }
 0x102   : > { %v772_v16 = vpop.f32.mrf.mxu0  ;;  %788 = vmatmul.mubr.msk.f32.vlgmr.msra.gmra.mxu1 %vm202_vm0, %v332_v12  ;;  %790 = vmatprep.subr.mxu1 %v953_v10 }
 0x103   : > { %791 = vmatpush3.msra.mxu1 %v772_v16  ;;  %794 = vmatprep.mubr.msk.f32.mxu1 %vm954_vm1, %v953_v10 }
 0x104   : > { %v313_v17 = vpop.f32.mrf.mxu0  ;;  %792 = vmatprep.subr.mxu1 %v953_v10 }
 0x105   : > { %793 = vmatpush3.msra.mxu1 %v313_v17 }
 0x106   : > { %v775_v18 = vpop.f32.mrf.mxu0  ;;  %795 = vmatmul.mubr.msk.f32.vlgmr.msra.gmra.mxu1 %vm202_vm0, %v332_v12  ;;  %797 = vmatprep.subr.mxu1 %v953_v10 }
 0x107   : > { %798 = vmatpush3.msra.mxu1 %v775_v18  ;;  %801 = vmatprep.mubr.msk.f32.mxu1 %vm954_vm1, %v953_v10 }
 0x108   : > { %v323_v19 = vpop.f32.mrf.mxu0  ;;  %799 = vmatprep.subr.mxu1 %v953_v10 }
 0x109   : > { %800 = vmatpush3.msra.mxu1 %v323_v19 }
 0x10a   : > { %802 = vmatmul.mubr.msk.f32.vlgmr.msra.gmra.mxu1 %vm202_vm0, %v332_v12 }
 0x1be   : > { %v402_v20 = vpop.f32.mrf.mxu1 }
 0x1bf   : > { %617 = vst.msk [vmem:[%s189_s20] sm:$0xff] %vm616_vm2, %v402_v20 }
 0x1c0   : > { %v782_v21 = vpop.f32.mrf.mxu1 }
 0x1c2   : > { %v472_v22 = vpop.f32.mrf.mxu1 }
 0x1c3   : > { %618 = vst.msk [vmem:[%s189_s20 + $0x8] sm:$0xff] %vm616_vm2, %v472_v22 }
 0x1c4   : > { %v789_v23 = vpop.f32.mrf.mxu1 }
 0x1c6   : > { %v542_v24 = vpop.f32.mrf.mxu1 }
 0x1c7   : > { %619 = vst.msk [vmem:[%s189_s20 + $0x10] sm:$0xff] %vm616_vm2, %v542_v24 }
 0x1c8   : > { %v796_v25 = vpop.f32.mrf.mxu1 }
 0x1ca   : > { %v612_v26 = vpop.f32.mrf.mxu1 }
 0x1cb   : > { %620 = vst.msk [vmem:[%s189_s20 + $0x18] sm:$0xff] %vm616_vm2, %v612_v26 }
 0x1cc   : > { %v803_v27 = vpop.f32.mrf.mxu1 }
 0x1cd   : > { %897 = shalt.err (!%p894_p10)
}
 0x1ce   : > { %s898_s4 = scalar_lea.hbm %s1118_s29, 512  ;;  %s902_s8 = scalar_lea.hbm %s1165_s3, 1024 }
 0x1cf   : > { %p899_p0 = scmp.ne.s32.totalorder %s1118_s29, %s898_s4  ;;  %p903_p1 = scmp.lt.s32.totalorder %s1118_s29, %s1165_s3 }
 0x1d0   : > { %p904_p3 = scmp.lt.s32.totalorder %s902_s8, %s898_s4 }
 0x1d1   : > { %p900_p2 = pnand %p899_p0, %p1174_p12 }
 0x1d2   : > { %p905_p6 = por %p904_p3, %p903_p1 }
 0x1d3   : > { %p901_p9 = pneg %p900_p2 }
 0x1d5   : > { %p906_p11 = pnand %p905_p6, %p901_p9 }
 0x1d7   : > { %909 = shalt.err (!%p906_p11)
}
 0x1d8   : > { %s956_s19 = smov 128   ;;  %s957_s20 = smov 8  }
 0x1d9   : > { %806 = dma.vmem_to_hbm [thread:$0]  (%p1174_p12), %s1112_s22, 512, %s1118_s29, %s622_s30, %s956_s19, %s956_s19, %s957_s20  }
 0x1da PF: > { %s650_s26 = sand.u32 1, %s936_s12   ;;  %p1175_p13 = scmp.ne.s32.totalorder %s1171_s25, 0 }
 0x1db   : > { %p1176_p4 = scmp.ge.s32.totalorder %s948_s15, 2  ;;  %s651_s27 = scalar_lea.sflag [#allocation4], %s650_s26 }
 0x1dd   : > { %p813_p5 = pnand %p1176_p4, %p1175_p13 }
 0x1df   : > { %p814_p7 = pneg %p813_p5 }
 0x1e1   : > { %931 = dma.done.wait (%p814_p7), %s651_s27, 512  }
 0x1e2   : > { %933 = vsyncadd (%p814_p7), %s651_s27, 4294966784  ;;  %p16_p8 = scmp.ge.s32.totalorder %s1003_s18, 4   ;;  %s1177_s12 = smov %s940_s13 }
 0x1e3   : > { %s1178_s13 = smov %s944_s14  ;;  %s1179_s14 = smov %s1015_s21 }
 0x1e4   : > { %s1180_s15 = smov %s1003_s18  ;;  %18 = sbr.rel (!%p16_p8) target bundleno = 5 (0x5), region = 77 }
 0x1e9   :  { %656 = vsyncpa [#allocation3], 1 }
 0x1ea   :  { %658 = vsyncpa [#allocation3 + $0x1], 1 }
 0x1eb   :  { %659 = vsyncpa [#allocation4], 1 }
 0x1ec   :  { %661 = vsyncpa [#allocation4 + $0x1], 1 }

</bundles_post_ra>
